<compile_context>
chip_gen: v7x
topology: tpu7x:2x2x1
jax: 0.10.0
libtpu: 0.0.40
codegen_flags: <defaults>
</compile_context>

<pallas_src>
import jax
import jax.numpy as jnp
from jax.experimental import pallas as pl
from jax.experimental.pallas import tpu as pltpu


def _round_up(n, m):
    return -(-n // m) * m


def _attention_block_kernel(x_ref, w1_ref, b1_ref, w2_ref, b2_ref, o_ref):
    # x_ref:  (tb, F) input tile (native dtype, fed straight to the MXU)
    # w1_ref: (F, H)  first linear weight, pre-transposed to (in, out)
    # b1_ref: (1, H)  f32 bias
    # w2_ref: (H, F)  second linear weight, pre-transposed to (in, out)
    # b2_ref: (1, F)  f32 bias
    # o_ref:  (tb, F)

    # hidden = ReLU(x @ W1^T + b1): MXU matmul in the native dtype, f32 acc.
    h = jnp.dot(x_ref[...], w1_ref[...], preferred_element_type=jnp.float32)
    h = jnp.maximum(h + b1_ref[...], 0.0)

    # logits = hidden @ W2^T + b2 (hidden cast back to the weight dtype so a
    # bf16 model keeps the MXU at full rate; accumulation stays f32).
    logits = jnp.dot(h.astype(w2_ref.dtype), w2_ref[...],
                     preferred_element_type=jnp.float32)
    logits = logits + b2_ref[...]

    # Exact sigmoid: exp lands on the EUP, divide is exact. This kernel is
    # HBM-bound, so the EUP/VALU slots have slack -- no approx reciprocal.
    attn = 1.0 / (1.0 + jnp.exp(-logits))

    # Gate: re-read x from VMEM (spare vld slot) instead of keeping the copy
    # used by the first matmul live across both dots + the sigmoid.
    o_ref[...] = (x_ref[...].astype(jnp.float32) * attn).astype(o_ref.dtype)


def _tpu_vmem_and_cores():
    """(VMEM capacity bytes, has-2-TensorCores?) with safe fallbacks."""
    vmem = 64 * 1024 * 1024
    two_tc = False
    try:
        info = pltpu.get_tpu_info()
        vmem = int(getattr(info, "vmem_capacity_bytes", vmem))
        cores = None
        for attr in ("num_cores", "tensorcore_count", "num_tensorcores",
                     "core_count"):
            cores = getattr(info, attr, None)
            if cores:
                break
        if cores:
            two_tc = int(cores) >= 2
        else:
            ver = getattr(info, "chip_version", None)
            two_tc = ("7" in str(ver)) if ver is not None else False
    except Exception:
        pass  # not on TPU / info unavailable: conservative defaults above
    return vmem, two_tc


def _pick_batch_tile(B, cap_rows, sub, two_tc):
    """Rows per grid step, generation-aware."""
    full = _round_up(B, sub)
    cap = max(sub, (cap_rows // sub) * sub)
    if not two_tc:
        # v5e / v6e: the grid is a sequential loop on one TensorCore -- use the
        # largest tile that fits the VMEM budget (no forced splitting).
        if full <= cap:
            return full
        for m in (256, 128, sub):          # MXU-friendly M tile when capped
            if cap >= m:
                return (cap // m) * m
        return sub
    # v7x: two TensorCores share the "parallel" batch axis -- aim for an even
    # number of balanced grid steps (unless the batch is tiny).
    if full <= 2 * sub:
        return min(full, cap)
    steps = 2
    while True:
        tb = _round_up(-(-B // steps), sub)
        if tb <= cap:
            return tb
        steps += 2


def prepare_attention_params(w1, b1, w2, b2, dtype=None):
    """One-time parameter prep (keep OUT of the per-call path).

    PyTorch nn.Linear layout in: w1 [H, F], b1 [H], w2 [F, H], b2 [F].
    Returns (in, out)-layout weights and 2-D f32 biases to feed the kernel.
    """
    dtype = dtype or w1.dtype
    w1_t = jnp.asarray(w1.T, dtype)                      # (F, H)
    w2_t = jnp.asarray(w2.T, dtype)                      # (H, F)
    b1_r = jnp.asarray(b1, jnp.float32).reshape(1, -1)   # (1, H)
    b2_r = jnp.asarray(b2, jnp.float32).reshape(1, -1)   # (1, F)
    return w1_t, b1_r, w2_t, b2_r


def attention_block(x, w1_t, b1, w2_t, b2, *, tb=None):
    """Fused AttentionBlock forward: x * sigmoid(relu(x @ W1^T + b1) @ W2^T + b2)."""
    B, F = x.shape
    F2, H = w1_t.shape
    assert F2 == F and w2_t.shape == (H, F)
    assert b1.shape == (1, H) and b2.shape == (1, F)

    dtype = x.dtype
    itemsize = jnp.dtype(dtype).itemsize
    sub = {1: 32, 2: 16, 4: 8}.get(itemsize, 8)          # sublane multiple

    vmem_cap, two_tc = _tpu_vmem_and_cores()
    # Budget: most of physical VMEM, with headroom for Mosaic-internal scratch.
    budget = max(24 << 20, min(int(vmem_cap * 0.75), vmem_cap - (8 << 20)))

    # Resident weights are single-buffered; x/o tiles are double-buffered and
    # the f32 intermediates (h, logits, attn, gate) are accounted per row.
    weight_bytes = 2 * F * H * itemsize + (F + H) * 4
    per_row_bytes = 4 * F * itemsize + (H + 2 * F) * 4
    reserve = 2 << 20
    cap_rows = (budget - weight_bytes - reserve) // per_row_bytes
    if cap_rows < sub:
        # TODO(synk): switch to K/H-tiled weights (extra "arbitrary" grid axis
        # over H with an f32 accumulator scratch) once the resident weights no
        # longer fit the VMEM budget -- needed on v7x (64 MiB) well before
        # v5e/v6e (128 MiB).
        raise NotImplementedError(
            f"resident weights (~{weight_bytes / 2**20:.1f} MiB) exceed the "
            f"{budget / 2**20:.0f} MiB VMEM budget; K/H tiling not implemented")

    if tb is None:
        tb = _pick_batch_tile(B, cap_rows, sub, two_tc)
    tb = max(1, min(int(tb), max(B, 1)))
    grid_n = -(-B // tb)
    if grid_n == 1:
        tb = B          # full-dim block: no sublane padding, no masked remainder

    def resident_spec(shape):
        # Constant for every grid step: single-buffer it when the grid is
        # pipelined (double-buffering a constant block is pure VMEM waste).
        if grid_n > 1:
            return pl.BlockSpec(shape, lambda i: (0, 0),
                                pipeline_mode=pl.Buffered(1))
        return pl.BlockSpec(shape, lambda i: (0, 0))

    cost = pl.CostEstimate(
        flops=2 * 2 * B * F * H,                         # two matmuls
        transcendentals=B * F,                           # exp in the sigmoid
        bytes_accessed=2 * B * F * itemsize + 2 * F * H * itemsize + (F + H) * 4,
    )

    return pl.pallas_call(
        _attention_block_kernel,
        out_shape=jax.ShapeDtypeStruct((B, F), dtype),
        grid_spec=pltpu.PrefetchScalarGridSpec(
            num_scalar_prefetch=0,
            grid=(grid_n,),
            in_specs=[
                pl.BlockSpec((tb, F), lambda i: (i, 0)),  # x tile (pipelined)
                resident_spec((F, H)),                    # W1^T, resident
                resident_spec((1, H)),                    # b1,   resident
                resident_spec((H, F)),                    # W2^T, resident
                resident_spec((1, F)),                    # b2,   resident
            ],
            out_specs=pl.BlockSpec((tb, F), lambda i: (i, 0)),
        ),
        compiler_params=pltpu.CompilerParams(
            dimension_semantics=("parallel",),
            vmem_limit_bytes=int(budget),
        ),
        cost_estimate=cost,
    )(x, w1_t, b1, w2_t, b2)


if __name__ == "__main__":
    # Small shapes consistent with the module: features=32, batch=16 (H=16).
    B, F = 16, 32
    H = F // 2

    key = jax.random.PRNGKey(0)
    kx, kw1, kb1, kw2, kb2 = jax.random.split(key, 5)

    def _bf16_grid(a):
        # Snap values to the bf16 grid so MXU precision-path differences
        # between the kernel and the XLA reference cannot affect comparison.
        return a.astype(jnp.bfloat16).astype(jnp.float32)

    x = _bf16_grid(jax.random.normal(kx, (B, F), dtype=jnp.float32))
    # PyTorch nn.Linear parameter shapes: weight (out, in), bias (out,).
    w1 = _bf16_grid(jax.random.normal(kw1, (H, F), jnp.float32) / jnp.sqrt(F))
    b1 = jax.random.normal(kb1, (H,), jnp.float32) * 0.1
    w2 = _bf16_grid(jax.random.normal(kw2, (F, H), jnp.float32) / jnp.sqrt(H))
    b2 = jax.random.normal(kb2, (F,), jnp.float32) * 0.1

    # One-time parameter prep (outside the per-call jitted path).
    params = prepare_attention_params(w1, b1, w2, b2)

    fn = jax.jit(attention_block)
    out = jax.block_until_ready(fn(x, *params))

    # Pure-JAX reference (exact sigmoid). Small slack only for MXU pass /
    # accumulation-order differences between Mosaic and the XLA reference.
    h_ref = jnp.maximum(x @ w1.T + b1, 0.0)
    ref = x * jax.nn.sigmoid(h_ref @ w2.T + b2)
    assert out.shape == ref.shape and out.dtype == ref.dtype
    assert jnp.allclose(out, ref, atol=5e-3, rtol=5e-3), "mismatch vs reference"

    print("KERNEL_OK")
</pallas_src>

<mosaic_0001>
module attributes {stable_mosaic.version = 11 : i64} {
  func.func @_attention_block_kernel(%arg0: i32, %arg1: memref<16x32xf32, #tpu.memory_space<vmem>>, %arg2: memref<32x16xf32, #tpu.memory_space<vmem>>, %arg3: memref<1x16xf32, #tpu.memory_space<vmem>>, %arg4: memref<16x32xf32, #tpu.memory_space<vmem>>, %arg5: memref<1x32xf32, #tpu.memory_space<vmem>>, %arg6: memref<16x32xf32, #tpu.memory_space<vmem>>) attributes {dimension_semantics = [#tpu.dimension_semantics<parallel>], iteration_bounds = array<i64: 1>, scalar_prefetch = 0 : i64, scratch_operands = 0 : i64, tpu.core_type = #tpu.core_type<tc>, window_params = [{transform_indices = @transform_0, window_bounds = array<i64: 16, 32>}, {pipeline_mode = #tpu.pipeline_mode<synchronous>, transform_indices = @transform_1, window_bounds = array<i64: 32, 16>}, {pipeline_mode = #tpu.pipeline_mode<synchronous>, transform_indices = @transform_2, window_bounds = array<i64: 1, 16>}, {pipeline_mode = #tpu.pipeline_mode<synchronous>, transform_indices = @transform_3, window_bounds = array<i64: 16, 32>}, {pipeline_mode = #tpu.pipeline_mode<synchronous>, transform_indices = @transform_4, window_bounds = array<i64: 1, 32>}, {transform_indices = @transform_5, window_bounds = array<i64: 16, 32>}]} {
    %c0 = arith.constant 0 : index
    %c0_0 = arith.constant 0 : index
    %0 = vector.load %arg1[%c0, %c0_0] : memref<16x32xf32, #tpu.memory_space<vmem>>, vector<16x32xf32>
    %c0_1 = arith.constant 0 : index
    %c0_2 = arith.constant 0 : index
    %1 = vector.load %arg2[%c0_1, %c0_2] : memref<32x16xf32, #tpu.memory_space<vmem>>, vector<32x16xf32>
    %cst = arith.constant dense<0.000000e+00> : vector<16x16xf32>
    %2 = tpu.matmul %0, %1, %cst {dimension_numbers = #tpu.dot_dimension_numbers<[1], [0], [0], [1], [0, 0, 1, 1], [], []>} : vector<16x32xf32>, vector<32x16xf32>, vector<16x16xf32> -> vector<16x16xf32>
    %c0_3 = arith.constant 0 : index
    %c0_4 = arith.constant 0 : index
    %3 = vector.load %arg3[%c0_3, %c0_4] : memref<1x16xf32, #tpu.memory_space<vmem>>, vector<1x16xf32>
    %4 = vector.broadcast %3 : vector<1x16xf32> to vector<16x16xf32>
    %5 = arith.addf %2, %4 : vector<16x16xf32>
    %cst_5 = arith.constant 0.000000e+00 : f32
    %6 = vector.broadcast %cst_5 : f32 to vector<16x16xf32>
    %7 = arith.maximumf %5, %6 : vector<16x16xf32>
    %c0_6 = arith.constant 0 : index
    %c0_7 = arith.constant 0 : index
    %8 = vector.load %arg4[%c0_6, %c0_7] : memref<16x32xf32, #tpu.memory_space<vmem>>, vector<16x32xf32>
    %cst_8 = arith.constant dense<0.000000e+00> : vector<16x32xf32>
    %9 = tpu.matmul %7, %8, %cst_8 {dimension_numbers = #tpu.dot_dimension_numbers<[1], [0], [0], [1], [0, 0, 1, 1], [], []>} : vector<16x16xf32>, vector<16x32xf32>, vector<16x32xf32> -> vector<16x32xf32>
    %c0_9 = arith.constant 0 : index
    %c0_10 = arith.constant 0 : index
    %10 = vector.load %arg5[%c0_9, %c0_10] : memref<1x32xf32, #tpu.memory_space<vmem>>, vector<1x32xf32>
    %11 = vector.broadcast %10 : vector<1x32xf32> to vector<16x32xf32>
    %12 = arith.addf %9, %11 : vector<16x32xf32>
    %cst_11 = arith.constant 0.000000e+00 : f32
    %13 = vector.broadcast %cst_11 : f32 to vector<16x32xf32>
    %14 = arith.subf %13, %12 : vector<16x32xf32>
    %15 = math.exp %14 : vector<16x32xf32>
    %cst_12 = arith.constant 1.000000e+00 : f32
    %16 = vector.broadcast %cst_12 : f32 to vector<16x32xf32>
    %17 = arith.addf %16, %15 : vector<16x32xf32>
    %cst_13 = arith.constant 1.000000e+00 : f32
    %18 = vector.broadcast %cst_13 : f32 to vector<16x32xf32>
    %19 = arith.divf %18, %17 : vector<16x32xf32>
    %c0_14 = arith.constant 0 : index
    %c0_15 = arith.constant 0 : index
    %20 = vector.load %arg1[%c0_14, %c0_15] : memref<16x32xf32, #tpu.memory_space<vmem>>, vector<16x32xf32>
    %21 = arith.mulf %20, %19 : vector<16x32xf32>
    %c0_16 = arith.constant 0 : index
    %c0_17 = arith.constant 0 : index
    %22 = vector.load %arg6[%c0_16, %c0_17] : memref<16x32xf32, #tpu.memory_space<vmem>>, vector<16x32xf32>
    tpu.vector_store %arg6[%c0_16, %c0_17], %21 {strides = array<i32>} : memref<16x32xf32, #tpu.memory_space<vmem>>, vector<16x32xf32>,
    return
  }
  func.func @transform_0(%arg0: i32) -> (i32, i32) {
    %c0_i32 = arith.constant 0 : i32
    %c0_i32_0 = arith.constant 0 : i32
    return %arg0, %c0_i32 : i32, i32
  }
  func.func @transform_1(%arg0: i32) -> (i32, i32) {
    %c0_i32 = arith.constant 0 : i32
    %c0_i32_0 = arith.constant 0 : i32
    %c0_i32_1 = arith.constant 0 : i32
    return %c0_i32, %c0_i32_0 : i32, i32
  }
  func.func @transform_2(%arg0: i32) -> (i32, i32) {
    %c0_i32 = arith.constant 0 : i32
    %c0_i32_0 = arith.constant 0 : i32
    %c0_i32_1 = arith.constant 0 : i32
    return %c0_i32, %c0_i32_0 : i32, i32
  }
  func.func @transform_3(%arg0: i32) -> (i32, i32) {
    %c0_i32 = arith.constant 0 : i32
    %c0_i32_0 = arith.constant 0 : i32
    %c0_i32_1 = arith.constant 0 : i32
    return %c0_i32, %c0_i32_0 : i32, i32
  }
  func.func @transform_4(%arg0: i32) -> (i32, i32) {
    %c0_i32 = arith.constant 0 : i32
    %c0_i32_0 = arith.constant 0 : i32
    %c0_i32_1 = arith.constant 0 : i32
    return %c0_i32, %c0_i32_0 : i32, i32
  }
  func.func @transform_5(%arg0: i32) -> (i32, i32) {
    %c0_i32 = arith.constant 0 : i32
    %c0_i32_0 = arith.constant 0 : i32
    return %arg0, %c0_i32 : i32, i32
  }
}

</mosaic_0001>

<bundles_post_ra>
// kernel: attention_block.1
= control target key start
LH: loop header
LB: loop body
LE: loop exit
PB: predicated region body
PF: predicated region fallthrough
CT: control target
= control target key end

     0   :  { %vm34_vm0 = vcmask 261120   ;;  %s401_s0 = inlined_call_operand.vmem [shape: f32[16,32], index: 0, kind: input, shape index: {}]   ;;  %s402_s1 = inlined_call_operand.vmem [shape: f32[32,16], index: 1, kind: input, shape index: {}]   ;;  %s403_s2 = inlined_call_operand.vmem [shape: f32[1,16], index: 2, kind: input, shape index: {}]   ;;  %s404_s3 = inlined_call_operand.vmem [shape: f32[16,32], index: 3, kind: input, shape index: {}]   ;;  %s405_s4 = inlined_call_operand.vmem [shape: f32[1,32], index: 4, kind: input, shape index: {}]   ;;  %s406_s5 = inlined_call_operand.hbm [shape: f32[16,32], index: 5, kind: output, shape index: {}]  }
   0x1   :  { %v23_v0 = vld [vmem:[%s402_s1] sm:$0xff]  ;;  %v24_v1 = vld [vmem:[%s402_s1 + $0x8] sm:$0xff]  ;;  %v25_v2 = vld [vmem:[%s402_s1 + $0x10] sm:$0xff] }
   0x2   :  { %v275_v3 = vpack.c.bf16 %v24_v1, %v23_v0  ;;  %v26_v4 = vld [vmem:[%s402_s1 + $0x18] sm:$0xff]  ;;  %v21_v5 = vld [vmem:[%s401_s0] sm:$0xff] }
   0x3   :  { %v279_v6 = vpack.c.bf16 %v26_v4, %v25_v2  ;;  %265 = vmatprep.mubr.msk.f32.mxu0 %vm34_vm0, %v21_v5 }
   0x4   :  { %10 = vsyncpa [#allocation3], 0  ;;  %276 = vmatprep.subr.bf16.mxu0 %v275_v3  ;;  %v22_v7 = vld [vmem:[%s401_s0 + $0x8] sm:$0xff]  ;;  %v118_v8 = vld [vmem:[%s404_s3] sm:$0xff]  ;;  %vm127_vm1 = vcmask 130048  }
   0x5   :  { %278 = vmatpush3.bf16.msra.mxu0 %v275_v3  ;;  %v119_v9 = vld [vmem:[%s404_s3 + $0x8] sm:$0xff]  ;;  %v241_v11 = vld [vmem:[%s403_s2] ss:$0 sm:$0xff]  ;;  %s322_s2 = smov [#allocation2]  }
   0x6   :  { %280 = vmatprep.subr.bf16.mxu0 %v279_v6  ;;  %v283_v10 = vpack.c.bf16 %v119_v9, %v118_v8  ;;  %v244_v18 = vld [vmem:[%s405_s4] ss:$0 sm:$0xff]  ;;  %s230_s3 = sshll.u32 %s322_s2, 4  ;;  %s231_s3 = int_to_ptr.vmem [resolvable:$true] %s230_s3 }
   0x7   :  { %s298_s4 = scalar_lea.vmem %s231_s3, 256  ;;  %p303_p1 = scmp.lt.s32.totalorder %s231_s3, %s231_s3 }
   0x8   :  { %284 = vmatprep.subr.bf16.mxu1 %v283_v10  ;;  %p299_p0 = scmp.ne.s32.totalorder %s231_s3, %s298_s4  ;;  %p304_p2 = scmp.lt.s32.totalorder %s298_s4, %s298_s4 }
   0x9   :  { %282 = vmatpush3.bf16.msra.mxu0 %v279_v6  ;;  %286 = vmatpush3.bf16.msra.mxu1 %v283_v10 }
   0xa   :  { %p305_p3 = por %p304_p2, %p303_p1 }
   0xc   :  { %266 = vmatmul.mubr.msk.f32.vlgmr.msra.gmra.mrb[0].mxu0 %vm34_vm0, %v22_v7  ;;  %p306_p4 = pnand %p305_p3, %p299_p0 }
  0xdf   :  { %v267_v12 = vpop.f32.mrb[0].mxu0 }
  0xe0   :  { %v113_v13 = vadd.f32 %v267_v12, %v241_v11  ;;  %v107_v14 = vpop.f32.mrb[1].mxu0 }
  0xe1   :  { %v108_v15 = vadd.f32 %v241_v11, %v107_v14 }
  0xe2   :  { %v117_v17 = vmax.f32 %v113_v13, 0.0 }
  0xe3   :  { %v116_v16 = vmax.f32 %v108_v15, 0.0 }
  0xe5   :  { %272 = vmatprep.mubr.msk.f32.mxu1 %vm127_vm1, %v116_v16 }
  0xe6   :  { %273 = vmatmul.mubr.msk.f32.vlgmr.msra.gmra.mrb[0].mxu1 %vm127_vm1, %v117_v17 }
 0x1b9   :  { %v274_v19 = vpop.f32.mrb[0].mxu1 }
 0x1ba   :  { %v206_v20 = vadd.f32 %v274_v19, %v244_v18  ;;  %v200_v21 = vpop.f32.mrb[1].mxu1 }
 0x1bb   :  { %v201_v22 = vadd.f32 %v244_v18, %v200_v21 }
 0x1bc   :  { %v210_v23 = vsub.f32 0.0, %v206_v20 }
 0x1bd   :  { %v209_v24 = vsub.f32 0.0, %v201_v22 }
 0x1be   :  { %v213_v25 = vmul.f32 1.442695, %v210_v23 }
 0x1bf   :  { %v211_v26 = vmul.f32 1.442695, %v209_v24 }
 0x1c0   :  { %290 = vpow2.f32 %v213_v25 }
 0x1c1   :  { %292 = vpow2.f32 %v211_v26 }
 0x1ca   :  { %v291_v27 = vpop.eup %290 }
 0x1cb   :  { %v293_v28 = vpop.eup %292  ;;  %v216_v29 = vadd.f32 1.0, %v291_v27 }
 0x1cc   :  { %v215_v30 = vadd.f32 1.0, %v293_v28 }
 0x1cd   :  { %294 = vrcp.f32 %v216_v29 }
 0x1ce   :  { %296 = vrcp.f32 %v215_v30 }
 0x1d7   :  { %v295_v31 = vpop.eup %294 }
 0x1d8   :  { %v297_v32 = vpop.eup %296  ;;  %v222_v33 = vmul.f32 %v295_v31, %v22_v7 }
 0x1d9   :  { %v221_v34 = vmul.f32 %v297_v32, %v21_v5 }
 0x1da   :  { %224 = vst.msk [vmem:[#allocation2 + $0x8] sm:$0xff] %vm34_vm0, %v222_v33 }
 0x1db   :  { %223 = vst.msk [vmem:[#allocation2] sm:$0xff] %vm34_vm0, %v221_v34 }
 0x1dc   :  { %309 = shalt.err (!%p306_p4)
}
 0x1dd   :  { %s310_s13 = scalar_lea.hbm %s406_s5, 256 }
 0x1de   :  { %p311_p5 = scmp.ne.s32.totalorder %s406_s5, %s310_s13  ;;  %p314_p6 = scmp.lt.u32.totalorder %s310_s13, %s406_s5 }
 0x1e0   :  { %p316_p7 = pnand %p314_p6, %p311_p5 }
 0x1e2   :  { %319 = shalt.err (!%p316_p7)
}
 0x1e3   :  { %s323_s18 = smov 128   ;;  %s324_s19 = smov 8  }
 0x1e4   :  { %236 = dma.vmem_to_hbm [thread:$0]  %s231_s3, 256, %s406_s5, [#allocation3], %s323_s18, %s323_s18, %s324_s19  }
 0x1e5   :  { %320 = dma.done.wait [#allocation3], 256  }
 0x1e6   :  { %321 = vsyncadd [#allocation3], 4294967040 }
 0x1e7   :  { %240 = vsyncpa [#allocation3], 1 }

</bundles_post_ra>
